<compile_context>
chip_gen: v6e
topology: v6e:2x2x1
jax: 0.10.0
libtpu: 0.0.40
codegen_flags: <defaults>
</compile_context>

<pallas_src>
import jax
import jax.numpy as jnp
from jax.experimental import pallas as pl
from jax.experimental.pallas import tpu as pltpu

IN_FEATURES = 28 * 28          # 784 (divisible by 8 sublanes; K-pad not needed)
H1, H2 = 512, 256
TB = 512                       # batch tile; 1024 also fits comfortably on v6e/v7x
NEG_SLOPE = 0.01               # nn.LeakyReLU() default


def _round_up(n, m):
    return ((n + m - 1) // m) * m


def _leaky_relu(x, slope=NEG_SLOPE):
    return jnp.where(x > 0, x, slope * x)


def discriminator_kernel(x_ref, w1_ref, b1_ref, w2_ref, b2_ref, w3_ref, b3_ref, o_ref):
    # Layer 1: cast the x tile to bf16 in-kernel (VPU work, hidden under the
    # MXU) and run a bf16 MXU matmul with f32 accumulation.  K = 784 is not a
    # multiple of 128; Mosaic pads the contraction tiles internally, which is
    # far cheaper than an extra HBM pass over x in the wrapper.
    x_bf = x_ref[...].astype(jnp.bfloat16)
    h1 = jnp.dot(x_bf, w1_ref[...], preferred_element_type=jnp.float32)
    h1 = _leaky_relu(h1 + b1_ref[...])                               # (tb, 512) f32

    # Layer 2: bf16 MXU matmul, f32 accumulation.
    h2 = jnp.dot(h1.astype(jnp.bfloat16), w2_ref[...],
                 preferred_element_type=jnp.float32)
    h2 = _leaky_relu(h2 + b2_ref[...])                               # (tb, 256) f32

    # Layer 3 (out_features = 1): VPU multiply + cross-lane reduce instead of a
    # (256,1) MXU pass.  The batch dim ends up on lanes so the (1, tb) output
    # block is stored lane-dense (unmasked vst) rather than (tb, 1) masked.
    logits = jnp.sum(h2 * w3_ref[...], axis=-1)                      # (tb,)
    probs = jax.nn.sigmoid(logits + b3_ref[0, 0])                    # (tb,)
    o_ref[...] = probs[None, :]                                      # (1, tb)


def prepare_params(params):
    """One-time conversion of the raw Linear params into kernel-ready arrays.

    Hoisted out of the per-call forward: in a GAN training loop the
    discriminator runs 2-3x per step, and re-casting ~2.3 MB of weights each
    call would add HLO launches that dwarf the kernel at small batch sizes.
    """
    w1, b1, w2, b2, w3, b3 = params
    return (
        jnp.asarray(w1, jnp.bfloat16),                      # (784, 512) bf16 for the MXU
        jnp.asarray(b1, jnp.float32).reshape(1, H1),        # (1, 512)
        jnp.asarray(w2, jnp.bfloat16),                      # (512, 256) bf16 for the MXU
        jnp.asarray(b2, jnp.float32).reshape(1, H2),        # (1, 256)
        jnp.asarray(w3, jnp.float32).reshape(1, H2),        # (1, 256) row, stays f32 (VPU)
        jnp.asarray(b3, jnp.float32).reshape(1, 1),         # scalar in SMEM
    )


def discriminator_forward(x, prep_params, tb=TB):
    """x: any shape that flattens to (-1, 784), e.g. (B, 1, 28, 28), float.
    prep_params: output of prepare_params()."""
    w1_bf, b1, w2_bf, b2, w3_row, b3 = prep_params

    x_flat = x.reshape(-1, IN_FEATURES)        # .view(-1, 784); no pad, no cast here
    B = x_flat.shape[0]

    # Clamp the tile to the (8-aligned) batch so tiny batches don't allocate a
    # full 512-row tile; rows past B in the ragged last tile are undefined but
    # row-independent and are sliced off below.
    tb = min(tb, _round_up(B, 8))
    n_tiles = pl.cdiv(B, tb)
    b_pad = n_tiles * tb

    out = pl.pallas_call(
        discriminator_kernel,
        out_shape=jax.ShapeDtypeStruct((1, b_pad), jnp.float32),
        grid=(n_tiles,),
        in_specs=[
            pl.BlockSpec((tb, IN_FEATURES), lambda i: (i, 0)),       # x tile (pipelined)
            pl.BlockSpec((IN_FEATURES, H1), lambda i: (0, 0)),       # W1 (VMEM-resident)
            pl.BlockSpec((1, H1), lambda i: (0, 0)),                 # b1
            pl.BlockSpec((H1, H2), lambda i: (0, 0)),                # W2 (VMEM-resident)
            pl.BlockSpec((1, H2), lambda i: (0, 0)),                 # b2
            pl.BlockSpec((1, H2), lambda i: (0, 0)),                 # w3 as a row
            pl.BlockSpec((1, 1), lambda i: (0, 0),
                         memory_space=pltpu.MemorySpace.SMEM),       # scalar b3
        ],
        out_specs=pl.BlockSpec((1, tb), lambda i: (0, i)),           # lane-dense output
        compiler_params=pltpu.CompilerParams(
            dimension_semantics=("parallel",),        # shard grid steps across TCs (v7x)
            vmem_limit_bytes=32 * 1024 * 1024,        # covers TB=512..1024 incl. v5e
        ),
    )(x_flat, w1_bf, b1, w2_bf, b2, w3_row, b3)

    return out[0, :B].reshape(B, 1)


def init_params(key):
    """Deterministic init mimicking PyTorch Linear default (uniform +/- 1/sqrt(fan_in)).
    Weights stored as (in_features, out_features)."""
    def linear(key, fan_in, fan_out):
        kw, kb = jax.random.split(key)
        bound = 1.0 / jnp.sqrt(fan_in)
        w = jax.random.uniform(kw, (fan_in, fan_out), jnp.float32, -bound, bound)
        b = jax.random.uniform(kb, (1, fan_out), jnp.float32, -bound, bound)
        return w, b

    k1, k2, k3 = jax.random.split(key, 3)
    w1, b1 = linear(k1, IN_FEATURES, H1)
    w2, b2 = linear(k2, H1, H2)
    w3, b3 = linear(k3, H2, 1)
    return (w1, b1, w2, b2, w3, b3)


def reference_forward(x, params):
    """Pure-JAX f32 reference for correctness check."""
    w1, b1, w2, b2, w3, b3 = params
    h = x.reshape(-1, IN_FEATURES).astype(jnp.float32)
    h = _leaky_relu(h @ w1 + b1)
    h = _leaky_relu(h @ w2 + b2)
    return jax.nn.sigmoid(h @ w3 + b3)


if __name__ == "__main__":
    key = jax.random.PRNGKey(0)
    k_params, k_x = jax.random.split(key)

    raw_params = init_params(k_params)
    prep_params = prepare_params(raw_params)     # one-time weight prep (hoisted)

    # MNIST-style input: batch=2, NCHW (2, 1, 28, 28)
    x = jax.random.normal(k_x, (2, 1, 28, 28), jnp.float32)

    out = discriminator_forward(x, prep_params)
    out = jax.block_until_ready(out)

    ref = reference_forward(x, raw_params)
    assert out.shape == (2, 1), out.shape
    # bf16 MXU matmuls (f32 accumulation) -> loosened tolerance vs. f32 reference.
    assert jnp.allclose(out, ref, atol=1e-2, rtol=1e-2), (out, ref)

    print("KERNEL_OK")
</pallas_src>

<mosaic_0001>
module attributes {stable_mosaic.version = 11 : i64} {
  func.func @discriminator_kernel(%arg0: i32, %arg1: memref<8x784xf32, #tpu.memory_space<vmem>>, %arg2: memref<784x512xbf16, #tpu.memory_space<vmem>>, %arg3: memref<1x512xf32, #tpu.memory_space<vmem>>, %arg4: memref<512x256xbf16, #tpu.memory_space<vmem>>, %arg5: memref<1x256xf32, #tpu.memory_space<vmem>>, %arg6: memref<1x256xf32, #tpu.memory_space<vmem>>, %arg7: memref<1x1xf32, #tpu.memory_space<smem>>, %arg8: memref<1x8xf32, #tpu.memory_space<vmem>>) attributes {dimension_semantics = [#tpu.dimension_semantics<parallel>], iteration_bounds = array<i64: 1>, scalar_prefetch = 0 : i64, scratch_operands = 0 : i64, tpu.core_type = #tpu.core_type<tc>, window_params = [{transform_indices = @transform_0, window_bounds = array<i64: 8, 784>}, {pipeline_mode = #tpu.pipeline_mode<synchronous>, transform_indices = @transform_1, window_bounds = array<i64: 784, 512>}, {pipeline_mode = #tpu.pipeline_mode<synchronous>, transform_indices = @transform_2, window_bounds = array<i64: 1, 512>}, {pipeline_mode = #tpu.pipeline_mode<synchronous>, transform_indices = @transform_3, window_bounds = array<i64: 512, 256>}, {pipeline_mode = #tpu.pipeline_mode<synchronous>, transform_indices = @transform_4, window_bounds = array<i64: 1, 256>}, {pipeline_mode = #tpu.pipeline_mode<synchronous>, transform_indices = @transform_5, window_bounds = array<i64: 1, 256>}, {transform_indices = @transform_6, window_bounds = array<i64: 1, 1>}, {transform_indices = @transform_7, window_bounds = array<i64: 1, 8>}]} {
    %c0 = arith.constant 0 : index
    %c0_0 = arith.constant 0 : index
    %0 = vector.load %arg1[%c0, %c0_0] : memref<8x784xf32, #tpu.memory_space<vmem>>, vector<8x784xf32>
    %1 = arith.truncf %0 : vector<8x784xf32> to vector<8x784xbf16>
    %c0_1 = arith.constant 0 : index
    %c0_2 = arith.constant 0 : index
    %2 = vector.load %arg2[%c0_1, %c0_2] : memref<784x512xbf16, #tpu.memory_space<vmem>>, vector<784x512xbf16>
    %cst = arith.constant dense<0.000000e+00> : vector<8x512xf32>
    %3 = tpu.matmul %1, %2, %cst {dimension_numbers = #tpu.dot_dimension_numbers<[1], [0], [0], [1], [0, 0, 1, 1], [], []>} : vector<8x784xbf16>, vector<784x512xbf16>, vector<8x512xf32> -> vector<8x512xf32>
    %c0_3 = arith.constant 0 : index
    %c0_4 = arith.constant 0 : index
    %4 = vector.load %arg3[%c0_3, %c0_4] : memref<1x512xf32, #tpu.memory_space<vmem>>, vector<1x512xf32>
    %5 = vector.broadcast %4 : vector<1x512xf32> to vector<8x512xf32>
    %6 = arith.addf %3, %5 : vector<8x512xf32>
    %cst_5 = arith.constant 0.000000e+00 : f32
    %7 = vector.broadcast %cst_5 : f32 to vector<8x512xf32>
    %8 = arith.cmpf ogt, %6, %7 : vector<8x512xf32>
    %cst_6 = arith.constant 0.00999999977 : f32
    %9 = vector.broadcast %cst_6 : f32 to vector<8x512xf32>
    %10 = arith.mulf %9, %6 : vector<8x512xf32>
    %11 = arith.select %8, %6, %10 : vector<8x512xi1>, vector<8x512xf32>
    %12 = arith.truncf %11 : vector<8x512xf32> to vector<8x512xbf16>
    %c0_7 = arith.constant 0 : index
    %c0_8 = arith.constant 0 : index
    %13 = vector.load %arg4[%c0_7, %c0_8] : memref<512x256xbf16, #tpu.memory_space<vmem>>, vector<512x256xbf16>
    %cst_9 = arith.constant dense<0.000000e+00> : vector<8x256xf32>
    %14 = tpu.matmul %12, %13, %cst_9 {dimension_numbers = #tpu.dot_dimension_numbers<[1], [0], [0], [1], [0, 0, 1, 1], [], []>} : vector<8x512xbf16>, vector<512x256xbf16>, vector<8x256xf32> -> vector<8x256xf32>
    %c0_10 = arith.constant 0 : index
    %c0_11 = arith.constant 0 : index
    %15 = vector.load %arg5[%c0_10, %c0_11] : memref<1x256xf32, #tpu.memory_space<vmem>>, vector<1x256xf32>
    %16 = vector.broadcast %15 : vector<1x256xf32> to vector<8x256xf32>
    %17 = arith.addf %14, %16 : vector<8x256xf32>
    %cst_12 = arith.constant 0.000000e+00 : f32
    %18 = vector.broadcast %cst_12 : f32 to vector<8x256xf32>
    %19 = arith.cmpf ogt, %17, %18 : vector<8x256xf32>
    %cst_13 = arith.constant 0.00999999977 : f32
    %20 = vector.broadcast %cst_13 : f32 to vector<8x256xf32>
    %21 = arith.mulf %20, %17 : vector<8x256xf32>
    %22 = arith.select %19, %17, %21 : vector<8x256xi1>, vector<8x256xf32>
    %c0_14 = arith.constant 0 : index
    %c0_15 = arith.constant 0 : index
    %23 = vector.load %arg6[%c0_14, %c0_15] : memref<1x256xf32, #tpu.memory_space<vmem>>, vector<1x256xf32>
    %24 = vector.broadcast %23 : vector<1x256xf32> to vector<8x256xf32>
    %25 = arith.mulf %22, %24 : vector<8x256xf32>
    %cst_16 = arith.constant dense<0.000000e+00> : vector<8xf32>
    %26 = vector.multi_reduction <add>, %25, %cst_16 [1] : vector<8x256xf32> to vector<8xf32>
    %c0_17 = arith.constant 0 : index
    %c0_18 = arith.constant 0 : index
    %27 = memref.load %arg7[%c0_17, %c0_18] : memref<1x1xf32, #tpu.memory_space<smem>>
    %28 = vector.broadcast %27 : f32 to vector<8xf32>
    %29 = arith.addf %26, %28 : vector<8xf32>
    %30 = arith.negf %29 : vector<8xf32>
    %31 = math.exp %30 : vector<8xf32>
    %cst_19 = arith.constant 1.000000e+00 : f32
    %32 = vector.broadcast %cst_19 : f32 to vector<8xf32>
    %33 = arith.addf %32, %31 : vector<8xf32>
    %34 = arith.divf %32, %33 : vector<8xf32>
    %35 = vector.shape_cast %34 : vector<8xf32> to vector<1x8xf32>
    %c0_20 = arith.constant 0 : index
    %c0_21 = arith.constant 0 : index
    %36 = vector.load %arg8[%c0_20, %c0_21] : memref<1x8xf32, #tpu.memory_space<vmem>>, vector<1x8xf32>
    tpu.vector_store %arg8[%c0_20, %c0_21], %35 {strides = array<i32>} : memref<1x8xf32, #tpu.memory_space<vmem>>, vector<1x8xf32>,
    return
  }
  func.func @transform_0(%arg0: i32) -> (i32, i32) {
    %c0_i32 = arith.constant 0 : i32
    %c0_i32_0 = arith.constant 0 : i32
    return %arg0, %c0_i32 : i32, i32
  }
  func.func @transform_1(%arg0: i32) -> (i32, i32) {
    %c0_i32 = arith.constant 0 : i32
    %c0_i32_0 = arith.constant 0 : i32
    %c0_i32_1 = arith.constant 0 : i32
    return %c0_i32, %c0_i32_0 : i32, i32
  }
  func.func @transform_2(%arg0: i32) -> (i32, i32) {
    %c0_i32 = arith.constant 0 : i32
    %c0_i32_0 = arith.constant 0 : i32
    %c0_i32_1 = arith.constant 0 : i32
    return %c0_i32, %c0_i32_0 : i32, i32
  }
  func.func @transform_3(%arg0: i32) -> (i32, i32) {
    %c0_i32 = arith.constant 0 : i32
    %c0_i32_0 = arith.constant 0 : i32
    %c0_i32_1 = arith.constant 0 : i32
    return %c0_i32, %c0_i32_0 : i32, i32
  }
  func.func @transform_4(%arg0: i32) -> (i32, i32) {
    %c0_i32 = arith.constant 0 : i32
    %c0_i32_0 = arith.constant 0 : i32
    %c0_i32_1 = arith.constant 0 : i32
    return %c0_i32, %c0_i32_0 : i32, i32
  }
  func.func @transform_5(%arg0: i32) -> (i32, i32) {
    %c0_i32 = arith.constant 0 : i32
    %c0_i32_0 = arith.constant 0 : i32
    %c0_i32_1 = arith.constant 0 : i32
    return %c0_i32, %c0_i32_0 : i32, i32
  }
  func.func @transform_6(%arg0: i32) -> (i32, i32) {
    %c0_i32 = arith.constant 0 : i32
    %c0_i32_0 = arith.constant 0 : i32
    %c0_i32_1 = arith.constant 0 : i32
    return %c0_i32, %c0_i32_0 : i32, i32
  }
  func.func @transform_7(%arg0: i32) -> (i32, i32) {
    %c0_i32 = arith.constant 0 : i32
    %c0_i32_0 = arith.constant 0 : i32
    return %c0_i32, %arg0 : i32, i32
  }
}

</mosaic_0001>

<bundles_post_ra>
// kernel: tpu_custom_call.1
= control target key start
LH: loop header
LB: loop body
LE: loop exit
PB: predicated region body
PF: predicated region fallthrough
CT: control target
= control target key end

     0   :  { %13 = vsyncpa [#allocation4], 0  ;;  %s3166_s0 = inlined_call_operand.hbm [shape: f32[2,784], index: 0, kind: input, shape index: {}]   ;;  %s3167_s1 = inlined_call_operand.hbm [shape: bf16[784,512], index: 1, kind: input, shape index: {}]   ;;  %s3168_s2 = inlined_call_operand.vmem [shape: f32[1,512], index: 2, kind: input, shape index: {}]   ;;  %s3169_s3 = inlined_call_operand.hbm [shape: bf16[512,256], index: 3, kind: input, shape index: {}]   ;;  %s3170_s4 = inlined_call_operand.vmem [shape: f32[1,256], index: 4, kind: input, shape index: {}]   ;;  %s3171_s5 = inlined_call_operand.vmem [shape: f32[1,256], index: 5, kind: input, shape index: {}]   ;;  %s3172_s6 = inlined_call_operand.<no memory space> [shape: f32[1,1], index: 6, kind: input, shape index: {}]   ;;  %s3173_s7 = inlined_call_operand.hbm [shape: f32[1,8], index: 7, kind: output, shape index: {}]  }
   0x1   :  { %14 = vsyncpa [#allocation7], 0 }
   0x2   :  { %15 = vsyncpa [#allocation5], 0 }
   0x3   :  { %20 = vsyncadd [#allocation4], 672  ;;  %s3020_s24 = smov [#allocation6]  }
   0x4   :  { %s33_s25 = sshll.u32 %s3020_s24, 4  ;;  %s34_s25 = int_to_ptr.vmem [resolvable:$true] %s33_s25 }
   0x5   :  { %s2942_s26 = scalar_lea.vmem %s34_s25, 25088  ;;  %p2947_p1 = scmp.lt.s32.totalorder %s34_s25, %s34_s25 }
   0x6   :  { %p2943_p0 = scmp.ne.s32.totalorder %s34_s25, %s2942_s26  ;;  %p2948_p2 = scmp.lt.s32.totalorder %s2942_s26, %s2942_s26 }
   0x8   :  { %p2949_p3 = por %p2948_p2, %p2947_p1 }
   0xa   :  { %p2950_p4 = pnand %p2949_p3, %p2943_p0 }
   0xc   :  { %2953 = shalt.err (!%p2950_p4)
}
   0xd   :  { %s3021_s27 = smov 256   ;;  %s3022_s28 = smov 16  }
   0xe   :  { %39 = dma.hbm_to_vmem [thread:$0]  %s3167_s1, 25088, %s34_s25, [#allocation7], %s3021_s27, %s3021_s27, %s3022_s28  }
   0xf   :  { %s3023_s8 = smov [#allocation3]  }
  0x10   :  { %s21_s9 = sshll.u32 %s3023_s8, 4  ;;  %s22_s9 = int_to_ptr.vmem [resolvable:$true] %s21_s9 }
  0x11   :  { %s2962_s10 = scalar_lea.vmem %s22_s9, 224  ;;  %s2966_s11 = scalar_lea.vmem %s22_s9, 896 }
  0x12   :  { %p2963_p5 = scmp.ne.s32.totalorder %s22_s9, %s2962_s10  ;;  %p2967_p6 = scmp.lt.s32.totalorder %s22_s9, %s22_s9 }
  0x13   :  { %p2968_p7 = scmp.lt.s32.totalorder %s2966_s11, %s2962_s10 }
  0x15   :  { %p2969_p8 = por %p2968_p7, %p2967_p6 }
  0x17   :  { %p2970_p9 = pnand %p2969_p8, %p2963_p5 }
  0x19   :  { %2973 = shalt.err (!%p2970_p9)
}
  0x1a   :  { %s3024_s12 = smov 224   ;;  %s3025_s13 = smov 14  }
  0x1b   :  { %27 = dma.hbm_to_vmem [thread:$0]  %s3166_s0, 224, %s22_s9, [#allocation4], %s3024_s12, %s3024_s12, %s3025_s13  }
  0x1c   :  { %s3026_s16 = smov [#allocation8]  }
  0x1d   :  { %s47_s17 = sshll.u32 %s3026_s16, 4  ;;  %s48_s17 = int_to_ptr.vmem [resolvable:$true] %s47_s17 }
  0x1e   :  { %s2982_s1 = scalar_lea.vmem %s48_s17, 8192  ;;  %p2987_p11 = scmp.lt.s32.totalorder %s48_s17, %s48_s17 }
  0x1f   :  { %p2983_p10 = scmp.ne.s32.totalorder %s48_s17, %s2982_s1  ;;  %p2988_p12 = scmp.lt.s32.totalorder %s2982_s1, %s2982_s1 }
  0x21   :  { %p2989_p13 = por %p2988_p12, %p2987_p11 }
  0x23   :  { %p2990_p0 = pnand %p2989_p13, %p2983_p10 }
  0x25   :  { %2993 = shalt.err (!%p2990_p0)
}
  0x26   :  { %s3027_s18 = smov 128   ;;  %s3028_s19 = smov 8  }
  0x27   :  { %53 = dma.hbm_to_vmem [thread:$0]  %s3169_s3, 8192, %s48_s17, [#allocation7], %s3027_s18, %s3027_s18, %s3028_s19  }
  0x28   :  { %3014 = dma.done.wait [#allocation4], 896  }
  0x29   :  { %3015 = vsyncadd [#allocation4], 4294966400 }
  0x2a   :  { %3016 = dma.done.wait [#allocation7], 33280  }
  0x2b   :  { %3017 = vsyncadd [#allocation7], 4294934016  ;;  %v2528_v0 = vld [vmem:[#allocation6 + $0xe4] ss:$16 sps:$4 sm:$0xff]   ;;  %v2532_v2 = vld [vmem:[#allocation6 + $0xe0] ss:$16 sps:$4 sm:$0xff]   ;;  %v93_v40 = vlaneseq }
  0x2c   :  { %v2530_v1 = vld [vmem:[#allocation6 + $0x2e4] ss:$16 sps:$4 sm:$0xff]   ;;  %1373 = vmatprep.subr.bf16.mxu0 %v2528_v0  ;;  %v2533_v3 = vld [vmem:[#allocation6 + $0x2e0] ss:$16 sps:$4 sm:$0xff]   ;;  %v3029_v38 = vmov 1983009808  }
  0x2d   :  { %1414 = vmatprep.subr.bf16.mxu1 %v2530_v1  ;;  %v2534_v4 = vld [vmem:[#allocation6 + $0xc4] ss:$16 sps:$4 sm:$0xff]   ;;  %1374 = vmatpush1.bf16.msra.mxu0 %v2532_v2  ;;  %v2538_v6 = vld [vmem:[#allocation6 + $0xc0] ss:$16 sps:$4 sm:$0xff]   ;;  %v91_v39 = vunpack.c.l.s4 %v3029_v38  ;;  %v3082_v46 = vshrl.u32 %v93_v40, 7  ;;  %vm1369_vm0 = vcmask 130048  }
  0x2e   :  { %1415 = vmatpush1.bf16.msra.mxu1 %v2533_v3  ;;  %v2536_v5 = vld [vmem:[#allocation6 + $0x2c4] ss:$16 sps:$4 sm:$0xff]   ;;  %1375 = vmatprep.subr.bf16.mxu0 %v2534_v4  ;;  %v2539_v7 = vld [vmem:[#allocation6 + $0x2c0] ss:$16 sps:$4 sm:$0xff]   ;;  %v2628_v58 = vld [vmem:[#allocation3 + $0x4] ss:$14 sps:$4 sm:$0xff]  }
  0x2f   :  { %1416 = vmatprep.subr.bf16.mxu1 %v2536_v5  ;;  %v2540_v8 = vld [vmem:[#allocation6 + $0xa4] ss:$16 sps:$4 sm:$0xff]   ;;  %v2544_v10 = vld [vmem:[#allocation6 + $0xa0] ss:$16 sps:$4 sm:$0xff]   ;;  %v92_v45 = vunpack.c.0.s8 %v91_v39  ;;  %v2651_v39 = vld [vmem:[#allocation6 + $0xcc] ss:$16 sps:$4 sm:$0xff]  }
  0x30   :  { %v2542_v9 = vld [vmem:[#allocation6 + $0x2a4] ss:$16 sps:$4 sm:$0xff]   ;;  %v2545_v11 = vld [vmem:[#allocation6 + $0x2a0] ss:$16 sps:$4 sm:$0xff]   ;;  %s3031_s25 = smov [#allocation9]   ;;  %vm2235_vm7 = vcmask 57344  }
  0x31   :  { %1376 = vmatpush1.bf16.msra.mxu0 %v2538_v6  ;;  %v2546_v12 = vld [vmem:[#allocation6 + $0x84] ss:$16 sps:$4 sm:$0xff]   ;;  %v2550_v14 = vld [vmem:[#allocation6 + $0x80] ss:$16 sps:$4 sm:$0xff]   ;;  %v3085_v53 = vsub.s32 %v92_v45, %v3082_v46  ;;  %s2243_s26 = sshll.u32 %s3031_s25, 4  ;;  %s2244_s26 = int_to_ptr.vmem [resolvable:$true] %s2243_s26 }
  0x32   :  { %1417 = vmatpush1.bf16.msra.mxu1 %v2539_v7  ;;  %1377 = vmatprep.subr.bf16.mxu0 %v2540_v8  ;;  %v2548_v13 = vld [vmem:[#allocation6 + $0x284] ss:$16 sps:$4 sm:$0xff]   ;;  %v2551_v15 = vld [vmem:[#allocation6 + $0x280] ss:$16 sps:$4 sm:$0xff]   ;;  %s2994_s27 = scalar_lea.vmem %s2244_s26, 16  ;;  %p2999_p2 = scmp.lt.s32.totalorder %s2244_s26, %s2244_s26 }
  0x33   :  { %1418 = vmatprep.subr.bf16.mxu1 %v2542_v9  ;;  %v2552_v16 = vld [vmem:[#allocation6 + $0x64] ss:$16 sps:$4 sm:$0xff]   ;;  %v2556_v18 = vld [vmem:[#allocation6 + $0x60] ss:$16 sps:$4 sm:$0xff]   ;;  %v103_v62 = vrot.slane %v2628_v58, %v3085_v53  ;;  %v2675_v58 = vld [vmem:[#allocation6 + $0x4c] ss:$16 sps:$4 sm:$0xff]   ;;  %p2995_p1 = scmp.ne.s32.totalorder %s2244_s26, %s2994_s27 }
  0x34   :  { %v2554_v17 = vld [vmem:[#allocation6 + $0x264] ss:$16 sps:$4 sm:$0xff]   ;;  %v2557_v19 = vld [vmem:[#allocation6 + $0x260] ss:$16 sps:$4 sm:$0xff]  }
  0x35   :  { %1378 = vmatpush1.bf16.msra.mxu0 %v2544_v10  ;;  %v2558_v20 = vld [vmem:[#allocation6 + $0x44] ss:$16 sps:$4 sm:$0xff]   ;;  %v2562_v22 = vld [vmem:[#allocation6 + $0x40] ss:$16 sps:$4 sm:$0xff]  }
  0x36   :  { %1419 = vmatpush1.bf16.msra.mxu1 %v2545_v11  ;;  %1379 = vmatprep.subr.bf16.mxu0 %v2546_v12  ;;  %v2560_v21 = vld [vmem:[#allocation6 + $0x244] ss:$16 sps:$4 sm:$0xff]   ;;  %v2563_v23 = vld [vmem:[#allocation6 + $0x240] ss:$16 sps:$4 sm:$0xff]  }
  0x37   :  { %1420 = vmatprep.subr.bf16.mxu1 %v2548_v13  ;;  %v2564_v24 = vld [vmem:[#allocation6 + $0x24] ss:$16 sps:$4 sm:$0xff]   ;;  %v2568_v26 = vld [vmem:[#allocation6 + $0x20] ss:$16 sps:$4 sm:$0xff]  }
  0x38   :  { %v2566_v25 = vld [vmem:[#allocation6 + $0x224] ss:$16 sps:$4 sm:$0xff]   ;;  %v2569_v27 = vld [vmem:[#allocation6 + $0x220] ss:$16 sps:$4 sm:$0xff]  }
  0x39   :  { %1380 = vmatpush1.bf16.msra.mxu0 %v2550_v14  ;;  %v2570_v28 = vld [vmem:[#allocation6 + $0x4] ss:$16 sps:$4 sm:$0xff]   ;;  %v2574_v30 = vld [vmem:[#allocation6] ss:$16 sps:$4 sm:$0xff]  }
  0x3a   :  { %1421 = vmatpush1.bf16.msra.mxu1 %v2551_v15  ;;  %1381 = vmatprep.subr.bf16.mxu0 %v2552_v16  ;;  %v2572_v29 = vld [vmem:[#allocation6 + $0x204] ss:$16 sps:$4 sm:$0xff]   ;;  %v2575_v31 = vld [vmem:[#allocation6 + $0x200] ss:$16 sps:$4 sm:$0xff]  }
  0x3b   :  { %1422 = vmatprep.subr.bf16.mxu1 %v2554_v17  ;;  %v2576_v32 = vld [vmem:[#allocation6 + $0x1e4] ss:$16 sps:$4 sm:$0xff]   ;;  %v2580_v34 = vld [vmem:[#allocation6 + $0x1e0] ss:$16 sps:$4 sm:$0xff]  }
  0x3c   :  { %v2578_v33 = vld [vmem:[#allocation6 + $0x3e4] ss:$16 sps:$4 sm:$0xff]   ;;  %v2581_v35 = vld [vmem:[#allocation6 + $0x3e0] ss:$16 sps:$4 sm:$0xff]  }
  0x3d   :  { %1382 = vmatpush1.bf16.msra.mxu0 %v2556_v18  ;;  %v2582_v36 = vld [vmem:[#allocation6 + $0x1c4] ss:$16 sps:$4 sm:$0xff]   ;;  %v2586_v41 = vld [vmem:[#allocation6 + $0x1c0] ss:$16 sps:$4 sm:$0xff]  }
  0x3e   :  { %1423 = vmatpush1.bf16.msra.mxu1 %v2557_v19  ;;  %1383 = vmatprep.subr.bf16.mxu0 %v2558_v20  ;;  %v2584_v37 = vld [vmem:[#allocation6 + $0x3c4] ss:$16 sps:$4 sm:$0xff]   ;;  %v2587_v42 = vld [vmem:[#allocation6 + $0x3c0] ss:$16 sps:$4 sm:$0xff]  }
  0x3f   :  { %1424 = vmatprep.subr.bf16.mxu1 %v2560_v21  ;;  %v2588_v43 = vld [vmem:[#allocation6 + $0x1a4] ss:$16 sps:$4 sm:$0xff]   ;;  %v2592_v47 = vld [vmem:[#allocation6 + $0x1a0] ss:$16 sps:$4 sm:$0xff]  }
  0x40   :  { %v2590_v44 = vld [vmem:[#allocation6 + $0x3a4] ss:$16 sps:$4 sm:$0xff]   ;;  %v2593_v48 = vld [vmem:[#allocation6 + $0x3a0] ss:$16 sps:$4 sm:$0xff]  }
  0x41   :  { %1384 = vmatpush1.bf16.msra.mxu0 %v2562_v22  ;;  %v2594_v49 = vld [vmem:[#allocation6 + $0x184] ss:$16 sps:$4 sm:$0xff]   ;;  %v2598_v51 = vld [vmem:[#allocation6 + $0x180] ss:$16 sps:$4 sm:$0xff]  }
  0x42   :  { %1425 = vmatpush1.bf16.msra.mxu1 %v2563_v23  ;;  %1385 = vmatprep.subr.bf16.mxu0 %v2564_v24  ;;  %v2596_v50 = vld [vmem:[#allocation6 + $0x384] ss:$16 sps:$4 sm:$0xff]   ;;  %v2599_v52 = vld [vmem:[#allocation6 + $0x380] ss:$16 sps:$4 sm:$0xff]  }
  0x43   :  { %1426 = vmatprep.subr.bf16.mxu1 %v2566_v25  ;;  %v2600_v54 = vld [vmem:[#allocation6 + $0x164] ss:$16 sps:$4 sm:$0xff]   ;;  %v2604_v63 = vld [vmem:[#allocation6 + $0x160] ss:$16 sps:$4 sm:$0xff]  }
  0x44   :  { %v2602_v55 = vld [vmem:[#allocation6 + $0x364] ss:$16 sps:$4 sm:$0xff]   ;;  %v2605_v0 = vld [vmem:[#allocation6 + $0x360] ss:$16 sps:$4 sm:$0xff]  }
  0x45   :  { %1386 = vmatpush1.bf16.msra.mxu0 %v2568_v26  ;;  %v2624_v56 = vld [vmem:[#allocation3] ss:$14 sps:$4 sm:$0xff]   ;;  %v2626_v57 = vld [vmem:[#allocation3 + $0x1c] ss:$14 sps:$4 sm:$0xff]  }
  0x46   :  { %1427 = vmatpush1.bf16.msra.mxu1 %v2569_v27  ;;  %1387 = vmatprep.subr.bf16.mxu0 %v2570_v28  ;;  %v2629_v59 = vld [vmem:[#allocation3 + $0x20] ss:$14 sps:$4 sm:$0xff]   ;;  %v96_v60 = vrot.slane %v2624_v56, %v3085_v53  ;;  %v110_v61 = vrot.slane %v2626_v57, %v3085_v53  ;;  %v2610_v6 = vld [vmem:[#allocation6 + $0x140] ss:$16 sps:$4 sm:$0xff]  }
  0x47   :  { %1428 = vmatprep.subr.bf16.mxu1 %v2572_v29  ;;  %v117_v1 = vrot.slane %v2629_v59, %v3085_v53  ;;  %v2606_v2 = vld [vmem:[#allocation6 + $0x144] ss:$16 sps:$4 sm:$0xff]   ;;  %v2611_v8 = vld [vmem:[#allocation6 + $0x340] ss:$16 sps:$4 sm:$0xff]   ;;  %v2667_v56 = vld [vmem:[#allocation6 + $0x68] ss:$16 sps:$4 sm:$0xff]  }
  0x48   :  { %v119_v3 = vcombine.high %v96_v60, %v110_v61  ;;  %v2608_v4 = vld [vmem:[#allocation6 + $0x344] ss:$16 sps:$4 sm:$0xff]   ;;  %v2616_v12 = vld [vmem:[#allocation6 + $0x120] ss:$16 sps:$4 sm:$0xff]   ;;  %v118_v17 = vcombine.low %v96_v60, %v110_v61  ;;  %v2728_v61 = vld [vmem:[#allocation3 + $0x24] ss:$14 sps:$4 sm:$0xff]  }
  0x49   :  { %1388 = vmatpush1.bf16.msra.mxu0 %v2574_v30  ;;  %v121_v5 = vcombine.high %v103_v62, %v117_v1  ;;  %v2612_v9 = vld [vmem:[#allocation6 + $0x124] ss:$16 sps:$4 sm:$0xff]   ;;  %v2617_v13 = vld [vmem:[#allocation6 + $0x320] ss:$16 sps:$4 sm:$0xff]   ;;  %v120_v18 = vcombine.low %v103_v62, %v117_v1  ;;  %v3115_v1 = vrot.slane %v2728_v61, %v3085_v53  ;;  %v2755_v61 = vld [vmem:[#allocation6 + $0x4ac] ss:$16 sps:$4 sm:$0xff]  }
  0x4a   :  { %1429 = vmatpush1.bf16.msra.mxu1 %v2575_v31  ;;  %1389 = vmatprep.subr.bf16.mxu0 %v2576_v32  ;;  %v3091_v7 = vpack.c.bf16 %v119_v3, %v119_v3  ;;  %v2614_v11 = vld [vmem:[#allocation6 + $0x324] ss:$16 sps:$4 sm:$0xff]   ;;  %v2647_v19 = vld [vmem:[#allocation3 + $0x28] ss:$14 sps:$4 sm:$0x33]   ;;  %v3097_v24 = vpack.c.bf16 %v118_v17, %v118_v17 }
  0x4b   :  { %1430 = vmatprep.subr.bf16.mxu1 %v2578_v33  ;;  %v3093_v10 = vpack.c.bf16 %v121_v5, %v121_v5  ;;  %v2618_v14 = vld [vmem:[#allocation6 + $0x104] ss:$16 sps:$4 sm:$0xff]   ;;  %v2622_v20 = vld [vmem:[#allocation6 + $0x100] ss:$16 sps:$4 sm:$0xff]   ;;  %v3099_v25 = vpack.c.bf16 %v120_v18, %v120_v18  ;;  %v153_v27 = vrot.slane %v2647_v19, %v3085_v53  ;;  %v2641_v31 = vld [vmem:[#allocation6 + $0xec] ss:$16 sps:$4 sm:$0xff]  }
  0x4c   :  { %1405 = vmatprep.mubr.bf16.mxu0 %v3091_v7  ;;  %v2620_v15 = vld [vmem:[#allocation6 + $0x304] ss:$16 sps:$4 sm:$0xff]   ;;  %v2623_v21 = vld [vmem:[#allocation6 + $0x300] ss:$16 sps:$4 sm:$0xff]   ;;  %v2679_v5 = vld [vmem:[#allocation6 + $0x28] ss:$16 sps:$4 sm:$0xff]  }
  0x4d   :  { %1390 = vmatpush2.bf16.msra.mxu0 %v2580_v34  ;;  %1446 = vmatprep.mubr.bf16.mxu1 %v3093_v10  ;;  %v2645_v16 = vld [vmem:[#allocation3 + $0xc] ss:$14 sps:$4 sm:$0x33]   ;;  %v3030_v34 = vmov 0   ;;  %v2727_v60 = vld [vmem:[#allocation3 + $0x8] ss:$14 sps:$4 sm:$0xff]  }
  0x4e   :  { %1431 = vmatpush2.bf16.msra.mxu1 %v2581_v35  ;;  %1391 = vmatprep.subr.bf16.mxu0 %v2582_v36  ;;  %v2632_v22 = vld [vmem:[#allocation6 + $0x4e4] ss:$16 sps:$4 sm:$0xff]   ;;  %v139_v26 = vrot.slane %v2645_v16, %v3085_v53  ;;  %v2630_v28 = vld [vmem:[#allocation6 + $0x4e0] ss:$16 sps:$4 sm:$0xff]   ;;  %v3112_v62 = vrot.slane %v2727_v60, %v3085_v53  ;;  %v2699_v16 = vld [vmem:[#allocation6 + $0x1cc] ss:$16 sps:$4 sm:$0xff]  }
  0x4f   :  { %1432 = vmatprep.subr.bf16.mxu1 %v2584_v37  ;;  %v2635_v23 = vld [vmem:[#allocation6 + $0x604] ss:$16 sps:$4 sm:$0xff]   ;;  %v2633_v29 = vld [vmem:[#allocation6 + $0x600] ss:$16 sps:$4 sm:$0xff]   ;;  %v2639_v37 = vld [vmem:[#allocation6 + $0xe8] ss:$16 sps:$4 sm:$0xff]  }
  0x50   :  { %v2638_v30 = vld [vmem:[#allocation6 + $0x4c4] ss:$16 sps:$4 sm:$0xff]   ;;  %v156_v32 = vcombine.low %v139_v26, %v153_v27  ;;  %v2636_v33 = vld [vmem:[#allocation6 + $0x4c0] ss:$16 sps:$4 sm:$0xff]   ;;  %v2697_v18 = vld [vmem:[#allocation6 + $0x1c8] ss:$16 sps:$4 sm:$0xff]  }
  0x51   :  { %1392 = vmatpush2.bf16.msra.mxu0 %v2586_v41  ;;  %v2644_v35 = vld [vmem:[#allocation6 + $0x4a4] ss:$16 sps:$4 sm:$0xff]   ;;  %v2642_v38 = vld [vmem:[#allocation6 + $0x4a0] ss:$16 sps:$4 sm:$0xff]   ;;  %v2711_v26 = vld [vmem:[#allocation6 + $0x18c] ss:$16 sps:$4 sm:$0xff]  }
  0x52   :  { %1433 = vmatpush2.bf16.msra.mxu1 %v2587_v42  ;;  %1393 = vmatprep.subr.bf16.mxu0 %v2588_v43  ;;  %v3106_v36 = vpack.c.bf16 %v156_v32, %v156_v32  ;;  %v2654_v41 = vld [vmem:[#allocation6 + $0x484] ss:$16 sps:$4 sm:$0xff]   ;;  %v2649_v42 = vld [vmem:[#allocation6 + $0xc8] ss:$16 sps:$4 sm:$0xff]   ;;  %v2652_v43 = vld [vmem:[#allocation6 + $0x480] ss:$16 sps:$4 sm:$0xff]  }
  0x53   :  { %1434 = vmatprep.subr.bf16.mxu1 %v2590_v44  ;;  %v2657_v44 = vld [vmem:[#allocation6 + $0xac] ss:$16 sps:$4 sm:$0xff]   ;;  %v2660_v45 = vld [vmem:[#allocation6 + $0x464] ss:$16 sps:$4 sm:$0xff]   ;;  %v2670_v57 = vld [vmem:[#allocation6 + $0x420] ss:$16 sps:$4 sm:$0xff]  }
  0x54   :  { %v2678_v59 = vld [vmem:[#allocation6 + $0x404] ss:$16 sps:$4 sm:$0xff]   ;;  %v2700_v19 = vld [vmem:[#allocation6 + $0x580] ss:$16 sps:$4 sm:$0xff]   ;;  %v2715_v32 = vld [vmem:[#allocation6 + $0x168] ss:$16 sps:$4 sm:$0xff]  }
  0x55   :  { %1394 = vmatpush2.bf16.msra.mxu0 %v2592_v47  ;;  %v2655_v47 = vld [vmem:[#allocation6 + $0xa8] ss:$16 sps:$4 sm:$0xff]   ;;  %v2684_v3 = vld [vmem:[#allocation6 + $0x5e4] ss:$16 sps:$4 sm:$0xff]  }
  0x56   :  { %1435 = vmatpush2.bf16.msra.mxu1 %v2593_v48  ;;  %1395 = vmatprep.subr.bf16.mxu0 %v2594_v49  ;;  %v2658_v48 = vld [vmem:[#allocation6 + $0x460] ss:$16 sps:$4 sm:$0xff]   ;;  %v2663_v49 = vld [vmem:[#allocation6 + $0x8c] ss:$16 sps:$4 sm:$0xff]   ;;  %v2690_v53 = vld [vmem:[#allocation6 + $0x5c4] ss:$16 sps:$4 sm:$0xff]  }
  0x57   :  { %1436 = vmatprep.subr.bf16.mxu1 %v2596_v50  ;;  %v2666_v50 = vld [vmem:[#allocation6 + $0x444] ss:$16 sps:$4 sm:$0xff]   ;;  %v2750_v60 = vld [vmem:[#allocation6 + $0x288] ss:$16 sps:$4 sm:$0xff]  }
  0x58   :  { %v2702_v17 = vld [vmem:[#allocation6 + $0x584] ss:$16 sps:$4 sm:$0xff]  }
  0x59   :  { %1396 = vmatpush2.bf16.msra.mxu0 %v2598_v51  ;;  %v2661_v51 = vld [vmem:[#allocation6 + $0x88] ss:$16 sps:$4 sm:$0xff]   ;;  %v2714_v27 = vld [vmem:[#allocation6 + $0x544] ss:$16 sps:$4 sm:$0xff]  }
  0x5a   :  { %1437 = vmatpush2.bf16.msra.mxu1 %v2599_v52  ;;  %1397 = vmatprep.subr.bf16.mxu0 %v2600_v54  ;;  %v2664_v52 = vld [vmem:[#allocation6 + $0x440] ss:$16 sps:$4 sm:$0xff]   ;;  %v2669_v54 = vld [vmem:[#allocation6 + $0x6c] ss:$16 sps:$4 sm:$0xff]  }
  0x5b   :  { %1438 = vmatprep.subr.bf16.mxu1 %v2602_v55  ;;  %v2672_v55 = vld [vmem:[#allocation6 + $0x424] ss:$16 sps:$4 sm:$0xff]  }
  0x5d   :  { %1398 = vmatpush2.bf16.msra.mxu0 %v2604_v63  ;;  %v2673_v63 = vld [vmem:[#allocation6 + $0x48] ss:$16 sps:$4 sm:$0xff]  }
  0x5e   :  { %1439 = vmatpush2.bf16.msra.mxu1 %v2605_v0  ;;  %1399 = vmatprep.subr.bf16.mxu0 %v2606_v2  ;;  %v2676_v0 = vld [vmem:[#allocation6 + $0x400] ss:$16 sps:$4 sm:$0xff]   ;;  %v2681_v2 = vld [vmem:[#allocation6 + $0x2c] ss:$16 sps:$4 sm:$0xff]  }
  0x5f   :  { %1440 = vmatprep.subr.bf16.mxu1 %v2608_v4  ;;  %v155_v4 = vcombine.high %v3112_v62, %v3115_v1 }
  0x61   :  { %1400 = vmatpush2.bf16.msra.mxu0 %v2610_v6  ;;  %v2682_v6 = vld [vmem:[#allocation6 + $0x5e0] ss:$16 sps:$4 sm:$0xff]  }
  0x62   :  { %1441 = vmatpush2.bf16.msra.mxu1 %v2611_v8  ;;  %1401 = vmatprep.subr.bf16.mxu0 %v2612_v9  ;;  %v2687_v8 = vld [vmem:[#allocation6 + $0xc] ss:$16 sps:$4 sm:$0xff]   ;;  %v2685_v9 = vld [vmem:[#allocation6 + $0x8] ss:$16 sps:$4 sm:$0xff]  }
  0x63   :  { %1442 = vmatprep.subr.bf16.mxu1 %v2614_v11  ;;  %v2688_v11 = vld [vmem:[#allocation6 + $0x5c0] ss:$16 sps:$4 sm:$0xff]  }
  0x65   :  { %1402 = vmatpush2.bf16.msra.mxu0 %v2616_v12  ;;  %v2693_v12 = vld [vmem:[#allocation6 + $0x1ec] ss:$16 sps:$4 sm:$0xff]  }
  0x66   :  { %1443 = vmatpush2.bf16.msra.mxu1 %v2617_v13  ;;  %1403 = vmatprep.subr.bf16.mxu0 %v2618_v14  ;;  %v2696_v13 = vld [vmem:[#allocation6 + $0x5a4] ss:$16 sps:$4 sm:$0xff]   ;;  %v2691_v14 = vld [vmem:[#allocation6 + $0x1e8] ss:$16 sps:$4 sm:$0xff]  }
  0x67   :  { %1444 = vmatprep.subr.bf16.mxu1 %v2620_v15  ;;  %v2694_v15 = vld [vmem:[#allocation6 + $0x5a0] ss:$16 sps:$4 sm:$0xff]  }
  0x69   :  { %1404 = vmatpush2.bf16.msra.mxu0 %v2622_v20  ;;  %v2705_v20 = vld [vmem:[#allocation6 + $0x1ac] ss:$16 sps:$4 sm:$0xff]  }
  0x6a   :  { %1445 = vmatpush2.bf16.msra.mxu1 %v2623_v21  ;;  %1455 = vmatprep.subr.bf16.mxu0 %v2632_v22  ;;  %v2708_v21 = vld [vmem:[#allocation6 + $0x564] ss:$16 sps:$4 sm:$0xff]   ;;  %v2703_v22 = vld [vmem:[#allocation6 + $0x1a8] ss:$16 sps:$4 sm:$0xff]  }
  0x6b   :  { %1510 = vmatprep.subr.bf16.mxu1 %v2635_v23  ;;  %v2706_v23 = vld [vmem:[#allocation6 + $0x560] ss:$16 sps:$4 sm:$0xff]  }
  0x6c   :  { %1406 = vmatmul.mubr.bf16.vlgmr.msra.gmra.mxu0 %v3097_v24 }
  0x6d   :  { %1447 = vmatmul.mubr.bf16.vlgmr.msra.gmra.mxu1 %v3099_v25  ;;  %1456 = vmatpush1.bf16.msra.mxu0 %v2630_v28  ;;  %v2709_v28 = vld [vmem:[#allocation6 + $0x188] ss:$16 sps:$4 sm:$0xff]  }
  0x6e   :  { %1511 = vmatpush1.bf16.msra.mxu1 %v2633_v29  ;;  %1457 = vmatprep.subr.bf16.mxu0 %v2638_v30  ;;  %v2712_v29 = vld [vmem:[#allocation6 + $0x540] ss:$16 sps:$4 sm:$0xff]   ;;  %v2717_v30 = vld [vmem:[#allocation6 + $0x16c] ss:$16 sps:$4 sm:$0xff]  }
  0x6f   :  { %1528 = vmatprep.mubr.bf16.mxu1 %v3030_v34  ;;  %1537 = vmatprep.subr.bf16.mxu1 %v2641_v31  ;;  %v2720_v31 = vld [vmem:[#allocation6 + $0x524] ss:$16 sps:$4 sm:$0xff]  }
  0x71   :  { %1458 = vmatpush1.bf16.msra.mxu0 %v2636_v33  ;;  %v2718_v33 = vld [vmem:[#allocation6 + $0x520] ss:$16 sps:$4 sm:$0xff]  }
  0x72   :  { %1459 = vmatprep.subr.bf16.mxu0 %v2644_v35  ;;  %v2723_v35 = vld [vmem:[#allocation6 + $0x14c] ss:$16 sps:$4 sm:$0xff]  }
  0x75   :  { %2449 = vmatmul.mubr.msk.bf16.vlgmr.msra.gmra.mxu1 %vm1369_vm0, %v3106_v36  ;;  %1460 = vmatpush1.bf16.msra.mxu0 %v2642_v38  ;;  %v2721_v38 = vld [vmem:[#allocation6 + $0x148] ss:$16 sps:$4 sm:$0xff]  }
  0x76   :  { %1538 = vmatpush1.bf16.msra.mxu1 %v2639_v37  ;;  %1461 = vmatprep.subr.bf16.mxu0 %v2654_v41  ;;  %v2726_v37 = vld [vmem:[#allocation6 + $0x504] ss:$16 sps:$4 sm:$0xff]   ;;  %v154_v41 = vcombine.low %v3112_v62, %v3115_v1  ;;  %v2758_v62 = vld [vmem:[#allocation6 + $0x26c] ss:$16 sps:$4 sm:$0xff]  }
  0x77   :  { %1539 = vmatprep.subr.bf16.mxu1 %v2651_v39  ;;  %1569 = vmatprep.mubr.bf16.mxu1 %v3091_v7  ;;  %v3119_v7 = vpack.c.bf16 %v155_v4, %v155_v4  ;;  %v2724_v39 = vld [vmem:[#allocation6 + $0x500] ss:$16 sps:$4 sm:$0xff]   ;;  %v2764_v1 = vld [vmem:[#allocation6 + $0x24c] ss:$16 sps:$4 sm:$0xff]  }
  0x78   :  { %v2770_v4 = vld [vmem:[#allocation6 + $0x22c] ss:$16 sps:$4 sm:$0xff]  }
  0x79   :  { %1462 = vmatpush1.bf16.msra.mxu0 %v2652_v43  ;;  %1487 = vmatprep.mubr.bf16.mxu0 %v3119_v7  ;;  %v2734_v43 = vld [vmem:[#allocation6 + $0x2ec] ss:$16 sps:$4 sm:$0xff]  }
  0x7a   :  { %1540 = vmatpush1.bf16.msra.mxu1 %v2649_v42  ;;  %1463 = vmatprep.subr.bf16.mxu0 %v2660_v45  ;;  %v2731_v42 = vld [vmem:[#allocation6 + $0x12c] ss:$16 sps:$4 sm:$0xff]   ;;  %v3124_v45 = vpack.c.bf16 %v154_v41, %v154_v41 }
  0x7b   :  { %1541 = vmatprep.subr.bf16.mxu1 %v2657_v44  ;;  %v2729_v44 = vld [vmem:[#allocation6 + $0x128] ss:$16 sps:$4 sm:$0xff]   ;;  %v2818_v41 = vld [vmem:[#allocation6 + $0x32c] ss:$16 sps:$4 sm:$0xff]  }
  0x7d   :  { %1464 = vmatpush1.bf16.msra.mxu0 %v2658_v48  ;;  %v2737_v48 = vld [vmem:[#allocation6 + $0x10c] ss:$16 sps:$4 sm:$0xff]  }
  0x7e   :  { %1542 = vmatpush1.bf16.msra.mxu1 %v2655_v47  ;;  %1465 = vmatprep.subr.bf16.mxu0 %v2666_v50  ;;  %v2732_v47 = vld [vmem:[#allocation6 + $0x2e8] ss:$16 sps:$4 sm:$0xff]  }
  0x7f   :  { %1543 = vmatprep.subr.bf16.mxu1 %v2663_v49  ;;  %v2740_v49 = vld [vmem:[#allocation6 + $0x2cc] ss:$16 sps:$4 sm:$0xff]   ;;  %v2735_v50 = vld [vmem:[#allocation6 + $0x108] ss:$16 sps:$4 sm:$0xff]  }
  0x81   :  { %1466 = vmatpush1.bf16.msra.mxu0 %v2664_v52  ;;  %v2743_v52 = vld [vmem:[#allocation6 + $0x4ec] ss:$16 sps:$4 sm:$0xff]  }
  0x82   :  { %1544 = vmatpush1.bf16.msra.mxu1 %v2661_v51  ;;  %1467 = vmatprep.subr.bf16.mxu0 %v2672_v55  ;;  %v2738_v51 = vld [vmem:[#allocation6 + $0x2c8] ss:$16 sps:$4 sm:$0xff]  }
  0x83   :  { %1545 = vmatprep.subr.bf16.mxu1 %v2669_v54  ;;  %v2746_v54 = vld [vmem:[#allocation6 + $0x2ac] ss:$16 sps:$4 sm:$0xff]   ;;  %v2741_v55 = vld [vmem:[#allocation6 + $0x4e8] ss:$16 sps:$4 sm:$0xff]  }
  0x85   :  { %1468 = vmatpush1.bf16.msra.mxu0 %v2670_v57  ;;  %v2749_v57 = vld [vmem:[#allocation6 + $0x4cc] ss:$16 sps:$4 sm:$0xff]  }
  0x86   :  { %1546 = vmatpush1.bf16.msra.mxu1 %v2667_v56  ;;  %1469 = vmatprep.subr.bf16.mxu0 %v2678_v59  ;;  %v2744_v56 = vld [vmem:[#allocation6 + $0x2a8] ss:$16 sps:$4 sm:$0xff]  }
  0x87   :  { %1547 = vmatprep.subr.bf16.mxu1 %v2675_v58  ;;  %v2752_v58 = vld [vmem:[#allocation6 + $0x28c] ss:$16 sps:$4 sm:$0xff]   ;;  %v2747_v59 = vld [vmem:[#allocation6 + $0x4c8] ss:$16 sps:$4 sm:$0xff]  }
  0x89   :  { %1470 = vmatpush1.bf16.msra.mxu0 %v2676_v0  ;;  %v2761_v0 = vld [vmem:[#allocation6 + $0x48c] ss:$16 sps:$4 sm:$0xff]  }
  0x8a   :  { %1548 = vmatpush1.bf16.msra.mxu1 %v2673_v63  ;;  %1471 = vmatprep.subr.bf16.mxu0 %v2684_v3  ;;  %v2756_v63 = vld [vmem:[#allocation6 + $0x268] ss:$16 sps:$4 sm:$0xff]   ;;  %v2767_v3 = vld [vmem:[#allocation6 + $0x46c] ss:$16 sps:$4 sm:$0xff]  }
  0x8b   :  { %1549 = vmatprep.subr.bf16.mxu1 %v2681_v2  ;;  %v2759_v2 = vld [vmem:[#allocation6 + $0x488] ss:$16 sps:$4 sm:$0xff]  }
  0x8d   :  { %1472 = vmatpush2.bf16.msra.mxu0 %v2682_v6  ;;  %v2768_v6 = vld [vmem:[#allocation6 + $0x228] ss:$16 sps:$4 sm:$0xff]  }
  0x8e   :  { %1550 = vmatpush1.bf16.msra.mxu1 %v2679_v5  ;;  %1473 = vmatprep.subr.bf16.mxu0 %v2690_v53  ;;  %v2765_v5 = vld [vmem:[#allocation6 + $0x468] ss:$16 sps:$4 sm:$0xff]  }
  0x8f   :  { %1551 = vmatprep.subr.bf16.mxu1 %v2687_v8  ;;  %v2776_v8 = vld [vmem:[#allocation6 + $0x20c] ss:$16 sps:$4 sm:$0xff]   ;;  %v2771_v53 = vld [vmem:[#allocation6 + $0x448] ss:$16 sps:$4 sm:$0xff]  }
  0x91   :  { %1474 = vmatpush2.bf16.msra.mxu0 %v2688_v11  ;;  %v2779_v11 = vld [vmem:[#allocation6 + $0x42c] ss:$16 sps:$4 sm:$0xff]  }
  0x92   :  { %1552 = vmatpush1.bf16.msra.mxu1 %v2685_v9  ;;  %1475 = vmatprep.subr.bf16.mxu0 %v2696_v13  ;;  %v2774_v9 = vld [vmem:[#allocation6 + $0x208] ss:$16 sps:$4 sm:$0xff]  }
  0x93   :  { %1553 = vmatprep.subr.bf16.mxu1 %v2693_v12  ;;  %v2782_v12 = vld [vmem:[#allocation6 + $0x3ec] ss:$16 sps:$4 sm:$0xff]   ;;  %v2777_v13 = vld [vmem:[#allocation6 + $0x428] ss:$16 sps:$4 sm:$0xff]  }
  0x95   :  { %1476 = vmatpush2.bf16.msra.mxu0 %v2694_v15  ;;  %v2785_v15 = vld [vmem:[#allocation6 + $0x40c] ss:$16 sps:$4 sm:$0xff]  }
  0x96   :  { %1554 = vmatpush2.bf16.msra.mxu1 %v2691_v14  ;;  %1477 = vmatprep.subr.bf16.mxu0 %v2702_v17  ;;  %v2780_v14 = vld [vmem:[#allocation6 + $0x3e8] ss:$16 sps:$4 sm:$0xff]  }
  0x97   :  { %1555 = vmatprep.subr.bf16.mxu1 %v2699_v16  ;;  %v2788_v16 = vld [vmem:[#allocation6 + $0x3cc] ss:$16 sps:$4 sm:$0xff]   ;;  %v2783_v17 = vld [vmem:[#allocation6 + $0x408] ss:$16 sps:$4 sm:$0xff]  }
  0x99   :  { %1478 = vmatpush2.bf16.msra.mxu0 %v2700_v19  ;;  %v2791_v19 = vld [vmem:[#allocation6 + $0x5ec] ss:$16 sps:$4 sm:$0xff]  }
  0x9a   :  { %1556 = vmatpush2.bf16.msra.mxu1 %v2697_v18  ;;  %1479 = vmatprep.subr.bf16.mxu0 %v2708_v21  ;;  %v2786_v18 = vld [vmem:[#allocation6 + $0x3c8] ss:$16 sps:$4 sm:$0xff]  }
  0x9b   :  { %1557 = vmatprep.subr.bf16.mxu1 %v2705_v20  ;;  %v2794_v20 = vld [vmem:[#allocation6 + $0x3ac] ss:$16 sps:$4 sm:$0xff]   ;;  %v2789_v21 = vld [vmem:[#allocation6 + $0x5e8] ss:$16 sps:$4 sm:$0xff]  }
  0x9d   :  { %1480 = vmatpush2.bf16.msra.mxu0 %v2706_v23  ;;  %v2797_v23 = vld [vmem:[#allocation6 + $0x5cc] ss:$16 sps:$4 sm:$0xff]  }
  0x9e   :  { %1558 = vmatpush2.bf16.msra.mxu1 %v2703_v22  ;;  %1481 = vmatprep.subr.bf16.mxu0 %v2714_v27  ;;  %v2792_v22 = vld [vmem:[#allocation6 + $0x3a8] ss:$16 sps:$4 sm:$0xff]  }
  0x9f   :  { %1559 = vmatprep.subr.bf16.mxu1 %v2711_v26  ;;  %v2800_v26 = vld [vmem:[#allocation6 + $0x38c] ss:$16 sps:$4 sm:$0xff]   ;;  %v2795_v27 = vld [vmem:[#allocation6 + $0x5c8] ss:$16 sps:$4 sm:$0xff]  }
  0xa1   :  { %1482 = vmatpush2.bf16.msra.mxu0 %v2712_v29  ;;  %v2803_v29 = vld [vmem:[#allocation6 + $0x5ac] ss:$16 sps:$4 sm:$0xff]  }
  0xa2   :  { %1560 = vmatpush2.bf16.msra.mxu1 %v2709_v28  ;;  %1483 = vmatprep.subr.bf16.mxu0 %v2720_v31  ;;  %v2798_v28 = vld [vmem:[#allocation6 + $0x388] ss:$16 sps:$4 sm:$0xff]  }
  0xa3   :  { %1561 = vmatprep.subr.bf16.mxu1 %v2717_v30  ;;  %v2806_v30 = vld [vmem:[#allocation6 + $0x36c] ss:$16 sps:$4 sm:$0xff]   ;;  %v2801_v31 = vld [vmem:[#allocation6 + $0x5a8] ss:$16 sps:$4 sm:$0xff]  }
  0xa5   :  { %1484 = vmatpush2.bf16.msra.mxu0 %v2718_v33  ;;  %v2809_v33 = vld [vmem:[#allocation6 + $0x58c] ss:$16 sps:$4 sm:$0xff]  }
  0xa6   :  { %1562 = vmatpush2.bf16.msra.mxu1 %v2715_v32  ;;  %1485 = vmatprep.subr.bf16.mxu0 %v2726_v37  ;;  %v2804_v32 = vld [vmem:[#allocation6 + $0x368] ss:$16 sps:$4 sm:$0xff]  }
  0xa7   :  { %1563 = vmatprep.subr.bf16.mxu1 %v2723_v35  ;;  %v2812_v35 = vld [vmem:[#allocation6 + $0x34c] ss:$16 sps:$4 sm:$0xff]   ;;  %v2807_v37 = vld [vmem:[#allocation6 + $0x588] ss:$16 sps:$4 sm:$0xff]  }
  0xa9   :  { %1486 = vmatpush2.bf16.msra.mxu0 %v2724_v39  ;;  %v2815_v39 = vld [vmem:[#allocation6 + $0x56c] ss:$16 sps:$4 sm:$0xff]  }
  0xaa   :  { %1564 = vmatpush2.bf16.msra.mxu1 %v2721_v38  ;;  %1578 = vmatprep.subr.bf16.mxu0 %v2734_v43  ;;  %v2810_v38 = vld [vmem:[#allocation6 + $0x348] ss:$16 sps:$4 sm:$0xff]  }
  0xab   :  { %1565 = vmatprep.subr.bf16.mxu1 %v2731_v42  ;;  %v2813_v42 = vld [vmem:[#allocation6 + $0x568] ss:$16 sps:$4 sm:$0xff]  }
  0xac   :  { %1488 = vmatmul.mubr.bf16.vlgmr.msra.gmra.mxu0 %v3124_v45  ;;  %v2816_v43 = vld [vmem:[#allocation6 + $0x328] ss:$16 sps:$4 sm:$0xff]  }
  0xad   :  { %1579 = vmatpush1.bf16.msra.mxu0 %v2732_v47  ;;  %1610 = vmatprep.mubr.bf16.mxu0 %v3093_v10  ;;  %v2753_v10 = vld [vmem:[#allocation6 + $0x4a8] ss:$16 sps:$4 sm:$0xff]   ;;  %v2824_v47 = vld [vmem:[#allocation6 + $0x30c] ss:$16 sps:$4 sm:$0xff]  }
  0xae   :  { %1566 = vmatpush2.bf16.msra.mxu1 %v2729_v44  ;;  %1580 = vmatprep.subr.bf16.mxu0 %v2740_v49  ;;  %v2821_v44 = vld [vmem:[#allocation6 + $0x54c] ss:$16 sps:$4 sm:$0xff]   ;;  %v2822_v49 = vld [vmem:[#allocation6 + $0x308] ss:$16 sps:$4 sm:$0xff]  }
  0xaf   :  { %1567 = vmatprep.subr.bf16.mxu1 %v2737_v48  ;;  %v2819_v48 = vld [vmem:[#allocation6 + $0x548] ss:$16 sps:$4 sm:$0xff]  }
  0xb1   :  { %1581 = vmatpush1.bf16.msra.mxu0 %v2738_v51  ;;  %v2830_v51 = vld [vmem:[#allocation6 + $0x60c] ss:$16 sps:$4 sm:$0xff]  }
  0xb2   :  { %1568 = vmatpush2.bf16.msra.mxu1 %v2735_v50  ;;  %1582 = vmatprep.subr.bf16.mxu0 %v2746_v54  ;;  %v2827_v50 = vld [vmem:[#allocation6 + $0x52c] ss:$16 sps:$4 sm:$0xff]   ;;  %v2828_v54 = vld [vmem:[#allocation6 + $0x608] ss:$16 sps:$4 sm:$0xff]  }
  0xb3   :  { %1619 = vmatprep.subr.bf16.mxu1 %v2743_v52  ;;  %v2825_v52 = vld [vmem:[#allocation6 + $0x528] ss:$16 sps:$4 sm:$0xff]  }
  0xb5   :  { %1570 = vmatmul.mubr.bf16.vlgmr.msra.gmra.mxu1 %v3097_v24  ;;  %1583 = vmatpush1.bf16.msra.mxu0 %v2744_v56  ;;  %v2762_v24 = vld [vmem:[#allocation6 + $0x248] ss:$16 sps:$4 sm:$0xff]   ;;  %v2836_v56 = vld [vmem:[#allocation8 + $0x74] ss:$8 sps:$4 sm:$0xff]  }
  0xb6   :  { %1620 = vmatpush1.bf16.msra.mxu1 %v2741_v55  ;;  %1584 = vmatprep.subr.bf16.mxu0 %v2752_v58  ;;  %v2833_v55 = vld [vmem:[#allocation6 + $0x50c] ss:$16 sps:$4 sm:$0xff]   ;;  %v2834_v58 = vld [vmem:[#allocation8 + $0x70] ss:$8 sps:$4 sm:$0xff]  }
  0xb7   :  { %1621 = vmatprep.subr.bf16.mxu1 %v2749_v57  ;;  %1651 = vmatprep.mubr.bf16.mxu1 %v3119_v7  ;;  %v2773_v7 = vld [vmem:[#allocation6 + $0x44c] ss:$16 sps:$4 sm:$0xff]   ;;  %v2831_v57 = vld [vmem:[#allocation6 + $0x508] ss:$16 sps:$4 sm:$0xff]  }
  0xb9   :  { %1585 = vmatpush1.bf16.msra.mxu0 %v2750_v60  ;;  %v2837_v60 = vld [vmem:[#allocation8 + $0x60] ss:$8 sps:$4 sm:$0xff]  }
  0xba   :  { %1622 = vmatpush1.bf16.msra.mxu1 %v2747_v59  ;;  %1586 = vmatprep.subr.bf16.mxu0 %v2758_v62  ;;  %v2839_v59 = vld [vmem:[#allocation8 + $0x64] ss:$8 sps:$4 sm:$0xff]  }
  0xbb   :  { %1623 = vmatprep.subr.bf16.mxu1 %v2755_v61  ;;  %v2842_v61 = vld [vmem:[#allocation8 + $0x54] ss:$8 sps:$4 sm:$0xff]   ;;  %v2845_v62 = vld [vmem:[#allocation8 + $0x44] ss:$8 sps:$4 sm:$0xff]  }
  0xbd   :  { %1587 = vmatpush1.bf16.msra.mxu0 %v2756_v63  ;;  %v2884_v63 = vld [vmem:[#allocation8 + $0x174] ss:$8 sps:$4 sm:$0xff]  }
  0xbe   :  { %1624 = vmatpush1.bf16.msra.mxu1 %v2753_v10  ;;  %1588 = vmatprep.subr.bf16.mxu0 %v2764_v1  ;;  %v2882_v10 = vld [vmem:[#allocation8 + $0x170] ss:$8 sps:$4 sm:$0xff]   ;;  %v2885_v1 = vld [vmem:[#allocation8 + $0x160] ss:$8 sps:$4 sm:$0xff]  }
  0xbf   :  { %1625 = vmatprep.subr.bf16.mxu1 %v2761_v0  ;;  %v2843_v0 = vld [vmem:[#allocation8 + $0x40] ss:$8 sps:$4 sm:$0xff]  }
  0xc1   :  { %1589 = vmatpush1.bf16.msra.mxu0 %v2762_v24  ;;  %v2888_v24 = vld [vmem:[#allocation8 + $0x150] ss:$8 sps:$4 sm:$0xff]  }
  0xc2   :  { %1626 = vmatpush1.bf16.msra.mxu1 %v2759_v2  ;;  %1590 = vmatprep.subr.bf16.mxu0 %v2770_v4  ;;  %v2846_v2 = vld [vmem:[#allocation8 + $0x30] ss:$8 sps:$4 sm:$0xff]   ;;  %v2893_v4 = vld [vmem:[#allocation8 + $0x144] ss:$8 sps:$4 sm:$0xff]  }
  0xc3   :  { %1627 = vmatprep.subr.bf16.mxu1 %v2767_v3  ;;  %v2851_v3 = vld [vmem:[#allocation8 + $0x24] ss:$8 sps:$4 sm:$0xff]  }
  0xc5   :  { %1591 = vmatpush1.bf16.msra.mxu0 %v2768_v6  ;;  %v2891_v6 = vld [vmem:[#allocation8 + $0x140] ss:$8 sps:$4 sm:$0xff]  }
  0xc6   :  { %1628 = vmatpush1.bf16.msra.mxu1 %v2765_v5  ;;  %1592 = vmatprep.subr.bf16.mxu0 %v2776_v8  ;;  %v2849_v5 = vld [vmem:[#allocation8 + $0x20] ss:$8 sps:$4 sm:$0xff]   ;;  %v2896_v8 = vld [vmem:[#allocation8 + $0x134] ss:$8 sps:$4 sm:$0xff]  }
  0xc7   :  { %1629 = vmatprep.subr.bf16.mxu1 %v2773_v7  ;;  %v2854_v7 = vld [vmem:[#allocation8 + $0x14] ss:$8 sps:$4 sm:$0xff]  }
  0xc9   :  { %1593 = vmatpush1.bf16.msra.mxu0 %v2774_v9  ;;  %v2894_v9 = vld [vmem:[#allocation8 + $0x130] ss:$8 sps:$4 sm:$0xff]  }
  0xca   :  { %1630 = vmatpush1.bf16.msra.mxu1 %v2771_v53  ;;  %1594 = vmatprep.subr.bf16.mxu0 %v2782_v12  ;;  %v2852_v53 = vld [vmem:[#allocation8 + $0x10] ss:$8 sps:$4 sm:$0xff]   ;;  %v2899_v12 = vld [vmem:[#allocation8 + $0x124] ss:$8 sps:$4 sm:$0xff]  }
  0xcb   :  { %1631 = vmatprep.subr.bf16.mxu1 %v2779_v11  ;;  %v2857_v11 = vld [vmem:[#allocation8 + $0x4] ss:$8 sps:$4 sm:$0xff]  }
  0xcd   :  { %1595 = vmatpush2.bf16.msra.mxu0 %v2780_v14  ;;  %v2897_v14 = vld [vmem:[#allocation8 + $0x120] ss:$8 sps:$4 sm:$0xff]  }
  0xce   :  { %1632 = vmatpush1.bf16.msra.mxu1 %v2777_v13  ;;  %1596 = vmatprep.subr.bf16.mxu0 %v2788_v16  ;;  %v2855_v13 = vld [vmem:[#allocation8] ss:$8 sps:$4 sm:$0xff]   ;;  %v2902_v16 = vld [vmem:[#allocation8 + $0x114] ss:$8 sps:$4 sm:$0xff]  }
  0xcf   :  { %1633 = vmatprep.subr.bf16.mxu1 %v2785_v15  ;;  %v2860_v15 = vld [vmem:[#allocation8 + $0xf4] ss:$8 sps:$4 sm:$0xff]  }
  0xd1   :  { %1597 = vmatpush2.bf16.msra.mxu0 %v2786_v18  ;;  %v2900_v18 = vld [vmem:[#allocation8 + $0x110] ss:$8 sps:$4 sm:$0xff]  }
  0xd2   :  { %1634 = vmatpush1.bf16.msra.mxu1 %v2783_v17  ;;  %1598 = vmatprep.subr.bf16.mxu0 %v2794_v20  ;;  %v2858_v17 = vld [vmem:[#allocation8 + $0xf0] ss:$8 sps:$4 sm:$0xff]   ;;  %v2905_v20 = vld [vmem:[#allocation8 + $0x104] ss:$8 sps:$4 sm:$0xff]  }
  0xd3   :  { %1635 = vmatprep.subr.bf16.mxu1 %v2791_v19  ;;  %v2863_v19 = vld [vmem:[#allocation8 + $0xe4] ss:$8 sps:$4 sm:$0xff]  }
  0xd5   :  { %1599 = vmatpush2.bf16.msra.mxu0 %v2792_v22  ;;  %v2903_v22 = vld [vmem:[#allocation8 + $0x100] ss:$8 sps:$4 sm:$0xff]  }
  0xd6   :  { %1636 = vmatpush2.bf16.msra.mxu1 %v2789_v21  ;;  %1600 = vmatprep.subr.bf16.mxu0 %v2800_v26  ;;  %v2861_v21 = vld [vmem:[#allocation8 + $0xe0] ss:$8 sps:$4 sm:$0xff]   ;;  %v2908_v26 = vld [vmem:[#allocation8 + $0x1f4] ss:$8 sps:$4 sm:$0xff]  }
  0xd7   :  { %1637 = vmatprep.subr.bf16.mxu1 %v2797_v23  ;;  %v2866_v23 = vld [vmem:[#allocation8 + $0xd4] ss:$8 sps:$4 sm:$0xff]  }
  0xd9   :  { %1601 = vmatpush2.bf16.msra.mxu0 %v2798_v28  ;;  %v2906_v28 = vld [vmem:[#allocation8 + $0x1f0] ss:$8 sps:$4 sm:$0xff]  }
  0xda   :  { %1638 = vmatpush2.bf16.msra.mxu1 %v2795_v27  ;;  %1602 = vmatprep.subr.bf16.mxu0 %v2806_v30  ;;  %v2864_v27 = vld [vmem:[#allocation8 + $0xd0] ss:$8 sps:$4 sm:$0xff]   ;;  %v2911_v30 = vld [vmem:[#allocation8 + $0x1e4] ss:$8 sps:$4 sm:$0xff]  }
  0xdb   :  { %1639 = vmatprep.subr.bf16.mxu1 %v2803_v29  ;;  %v2869_v29 = vld [vmem:[#allocation8 + $0xc4] ss:$8 sps:$4 sm:$0xff]  }
  0xdd   :  { %1603 = vmatpush2.bf16.msra.mxu0 %v2804_v32  ;;  %v2909_v32 = vld [vmem:[#allocation8 + $0x1e0] ss:$8 sps:$4 sm:$0xff]  }
  0xde   :  { %1640 = vmatpush2.bf16.msra.mxu1 %v2801_v31  ;;  %1604 = vmatprep.subr.bf16.mxu0 %v2812_v35  ;;  %v2867_v31 = vld [vmem:[#allocation8 + $0xc0] ss:$8 sps:$4 sm:$0xff]   ;;  %v2914_v35 = vld [vmem:[#allocation8 + $0x1d4] ss:$8 sps:$4 sm:$0xff]  }
  0xdf   :  { %1641 = vmatprep.subr.bf16.mxu1 %v2809_v33  ;;  %v2872_v33 = vld [vmem:[#allocation8 + $0xb4] ss:$8 sps:$4 sm:$0xff]  }
  0xe1   :  { %1605 = vmatpush2.bf16.msra.mxu0 %v2810_v38  ;;  %v2912_v38 = vld [vmem:[#allocation8 + $0x1d0] ss:$8 sps:$4 sm:$0xff]  }
  0xe2   :  { %1642 = vmatpush2.bf16.msra.mxu1 %v2807_v37  ;;  %1606 = vmatprep.subr.bf16.mxu0 %v2818_v41  ;;  %v2870_v37 = vld [vmem:[#allocation8 + $0xb0] ss:$8 sps:$4 sm:$0xff]   ;;  %v2873_v41 = vld [vmem:[#allocation8 + $0xa0] ss:$8 sps:$4 sm:$0xff]  }
  0xe3   :  { %1643 = vmatprep.subr.bf16.mxu1 %v2815_v39  ;;  %v2875_v39 = vld [vmem:[#allocation8 + $0xa4] ss:$8 sps:$4 sm:$0xff]  }
  0xe5   :  { %1607 = vmatpush2.bf16.msra.mxu0 %v2816_v43  ;;  %v2876_v43 = vld [vmem:[#allocation8 + $0x90] ss:$8 sps:$4 sm:$0xff]  }
  0xe6   :  { %1644 = vmatpush2.bf16.msra.mxu1 %v2813_v42  ;;  %1608 = vmatprep.subr.bf16.mxu0 %v2824_v47  ;;  %v2878_v42 = vld [vmem:[#allocation8 + $0x94] ss:$8 sps:$4 sm:$0xff]   ;;  %v2917_v47 = vld [vmem:[#allocation8 + $0x1c4] ss:$8 sps:$4 sm:$0xff]  }
  0xe7   :  { %1645 = vmatprep.subr.bf16.mxu1 %v2821_v44  ;;  %v2881_v44 = vld [vmem:[#allocation8 + $0x84] ss:$8 sps:$4 sm:$0xff]  }
  0xe9   :  { %1609 = vmatpush2.bf16.msra.mxu0 %v2822_v49 }
  0xea   :  { %1646 = vmatpush2.bf16.msra.mxu1 %v2819_v48  ;;  %1674 = vmatprep.subr.bf16.mxu0 %v2830_v51  ;;  %v2879_v51 = vld [vmem:[#allocation8 + $0x80] ss:$8 sps:$4 sm:$0xff]  }
  0xeb   :  { %1647 = vmatprep.subr.bf16.mxu1 %v2827_v50  ;;  %v2915_v50 = vld [vmem:[#allocation8 + $0x1c0] ss:$8 sps:$4 sm:$0xff]  }
  0xec   :  { %1611 = vmatmul.mubr.bf16.vlgmr.msra.gmra.mxu0 %v3099_v25  ;;  %v2840_v25 = vld [vmem:[#allocation8 + $0x50] ss:$8 sps:$4 sm:$0xff]  }
  0xed   :  { %1675 = vmatpush1.bf16.msra.mxu0 %v2828_v54  ;;  %1692 = vmatprep.mubr.bf16.mxu0 %v3030_v34  ;;  %v2887_v34 = vld [vmem:[#allocation8 + $0x164] ss:$8 sps:$4 sm:$0xff]  }
  0xee   :  { %1648 = vmatpush2.bf16.msra.mxu1 %v2825_v52  ;;  %2113 = vmatprep.subr.bf16.mxu0 %v2836_v56 }
  0xef   :  { %1649 = vmatprep.subr.bf16.mxu1 %v2833_v55  ;;  %v2920_v55 = vld [vmem:[#allocation8 + $0x1b4] ss:$8 sps:$4 sm:$0xff]  }
  0xf2   :  { %1650 = vmatpush2.bf16.msra.mxu1 %v2831_v57 }
  0xf3   :  { %2154 = vmatprep.subr.bf16.mxu1 %v2884_v63  ;;  %v2926_v63 = vld [vmem:[#allocation8 + $0x194] ss:$8 sps:$4 sm:$0xff]  }
  0xf4   :  { %2450 = vmatmul.mubr.msk.bf16.vlgmr.msra.gmra.mxu0 %vm1369_vm0, %v3106_v36  ;;  %v2890_v36 = vld [vmem:[#allocation8 + $0x154] ss:$8 sps:$4 sm:$0xff]  }
  0xf5   :  { %1652 = vmatmul.mubr.bf16.vlgmr.msra.gmra.mxu1 %v3124_v45  ;;  %2114 = vmatpush1.bf16.msra.mxu0 %v2834_v58  ;;  %v2848_v45 = vld [vmem:[#allocation8 + $0x34] ss:$8 sps:$4 sm:$0xff]   ;;  %v2918_v58 = vld [vmem:[#allocation8 + $0x1b0] ss:$8 sps:$4 sm:$0xff]  }
  0xf6   :  { %2115 = vmatprep.subr.bf16.mxu0 %v2839_v59  ;;  %2155 = vmatpush1.bf16.msra.mxu1 %v2882_v10 }
  0xf7   :  { %2156 = vmatprep.subr.bf16.mxu1 %v2887_v34 }
  0xf9   :  { %2116 = vmatpush1.bf16.msra.mxu0 %v2837_v60 }
  0xfa   :  { %2117 = vmatprep.subr.bf16.mxu0 %v2842_v61  ;;  %2157 = vmatpush1.bf16.msra.mxu1 %v2885_v1  ;;  %v2923_v61 = vld [vmem:[#allocation8 + $0x1a4] ss:$8 sps:$4 sm:$0xff]  }
  0xfb   :  { %2158 = vmatprep.subr.bf16.mxu1 %v2890_v36  ;;  %v2927_v36 = vld [vmem:[#allocation8 + $0x180] ss:$8 sps:$4 sm:$0xff]  }
  0xfd   :  { %2118 = vmatpush1.bf16.msra.mxu0 %v2840_v25 }
  0xfe   :  { %2119 = vmatprep.subr.bf16.mxu0 %v2845_v62  ;;  %2159 = vmatpush1.bf16.msra.mxu1 %v2888_v24  ;;  %v2921_v62 = vld [vmem:[#allocation8 + $0x1a0] ss:$8 sps:$4 sm:$0xff]  }
  0xff   :  { %2160 = vmatprep.subr.bf16.mxu1 %v2893_v4  ;;  %v367_v24 = vld [vmem:[%s3168_s2] sm:$0xf] }
 0x101   :  { %2120 = vmatpush1.bf16.msra.mxu0 %v2843_v0  ;;  %v2924_v0 = vld [vmem:[#allocation8 + $0x190] ss:$8 sps:$4 sm:$0xff]  }
 0x102   :  { %2121 = vmatprep.subr.bf16.mxu0 %v2848_v45  ;;  %2161 = vmatpush1.bf16.msra.mxu1 %v2891_v6  ;;  %v2929_v45 = vld [vmem:[#allocation8 + $0x184] ss:$8 sps:$4 sm:$0xff]  }
 0x103   :  { %2162 = vmatprep.subr.bf16.mxu1 %v2896_v8 }
 0x105   :  { %2122 = vmatpush1.bf16.msra.mxu0 %v2846_v2  ;;  %v3136_v2 = vsub.s32 0, %v3082_v46 }
 0x106   :  { %2123 = vmatprep.subr.bf16.mxu0 %v2851_v3  ;;  %2163 = vmatpush1.bf16.msra.mxu1 %v2894_v9  ;;  %v3142_v3 = vsub.s32 1, %v3082_v46 }
 0x107   :  { %2164 = vmatprep.subr.bf16.mxu1 %v2899_v12  ;;  %v372_v4 = vrot.slane %v367_v24, %v3136_v2 }
 0x109   :  { %2124 = vmatpush1.bf16.msra.mxu0 %v2849_v5  ;;  %v376_v5 = vrot.slane %v367_v24, %v3142_v3 }
 0x10a   :  { %2125 = vmatprep.subr.bf16.mxu0 %v2854_v7  ;;  %2165 = vmatpush1.bf16.msra.mxu1 %v2897_v14 }
 0x10b   :  { %2166 = vmatprep.subr.bf16.mxu1 %v2902_v16 }
 0x10d   :  { %2126 = vmatpush1.bf16.msra.mxu0 %v2852_v53 }
 0x10e   :  { %2127 = vmatprep.subr.bf16.mxu0 %v2857_v11  ;;  %2167 = vmatpush1.bf16.msra.mxu1 %v2900_v18 }
 0x10f   :  { %2168 = vmatprep.subr.bf16.mxu1 %v2905_v20 }
 0x111   :  { %2128 = vmatpush1.bf16.msra.mxu0 %v2855_v13 }
 0x112   :  { %2129 = vmatprep.subr.bf16.mxu0 %v2860_v15  ;;  %2169 = vmatpush1.bf16.msra.mxu1 %v2903_v22 }
 0x113   :  { %2170 = vmatprep.subr.bf16.mxu1 %v2908_v26 }
 0x115   :  { %2130 = vmatpush2.bf16.msra.mxu0 %v2858_v17 }
 0x116   :  { %2131 = vmatprep.subr.bf16.mxu0 %v2863_v19  ;;  %2171 = vmatpush2.bf16.msra.mxu1 %v2906_v28 }
 0x117   :  { %2172 = vmatprep.subr.bf16.mxu1 %v2911_v30  ;;  %v379_v30 = vsub.s32 2, %v3082_v46 }
 0x119   :  { %2132 = vmatpush2.bf16.msra.mxu0 %v2861_v21 }
 0x11a   :  { %2133 = vmatprep.subr.bf16.mxu0 %v2866_v23  ;;  %2173 = vmatpush2.bf16.msra.mxu1 %v2909_v32 }
 0x11b   :  { %2174 = vmatprep.subr.bf16.mxu1 %v2914_v35 }
 0x11d   :  { %2134 = vmatpush2.bf16.msra.mxu0 %v2864_v27 }
 0x11e   :  { %2135 = vmatprep.subr.bf16.mxu0 %v2869_v29  ;;  %2175 = vmatpush2.bf16.msra.mxu1 %v2912_v38 }
 0x11f   :  { %2176 = vmatprep.subr.bf16.mxu1 %v2917_v47 }
 0x121   :  { %2136 = vmatpush2.bf16.msra.mxu0 %v2867_v31  ;;  %v383_v31 = vsub.s32 3, %v3082_v46 }
 0x122   :  { %2137 = vmatprep.subr.bf16.mxu0 %v2872_v33  ;;  %2177 = vmatpush2.bf16.msra.mxu1 %v2915_v50  ;;  %v380_v33 = vrot.slane %v367_v24, %v379_v30 }
 0x123   :  { %2178 = vmatprep.subr.bf16.mxu1 %v2920_v55 }
 0x125   :  { %2138 = vmatpush2.bf16.msra.mxu0 %v2870_v37  ;;  %v384_v37 = vrot.slane %v367_v24, %v383_v31 }
 0x126   :  { %2139 = vmatprep.subr.bf16.mxu0 %v2875_v39  ;;  %2179 = vmatpush2.bf16.msra.mxu1 %v2918_v58 }
 0x127   :  { %2180 = vmatprep.subr.bf16.mxu1 %v2923_v61 }
 0x129   :  { %2140 = vmatpush2.bf16.msra.mxu0 %v2873_v41 }
 0x12a   :  { %2141 = vmatprep.subr.bf16.mxu0 %v2878_v42  ;;  %2181 = vmatpush2.bf16.msra.mxu1 %v2921_v62 }
 0x12b   :  { %2182 = vmatprep.subr.bf16.mxu1 %v2926_v63 }
 0x12c   :  { %v1407_v48 = vpop.f32.mrf.mxu0 }
 0x12d   :  { %v1448_v49 = vpop.f32.mrf.mxu1  ;;  %2142 = vmatpush2.bf16.msra.mxu0 %v2876_v43  ;;  %v1408_v6 = vadd.f32 %v1407_v48, %v372_v4 }
 0x12e   :  { %v1409_v52 = vpop.f32.mrf.mxu0  ;;  %2143 = vmatprep.subr.bf16.mxu0 %v2881_v44  ;;  %2183 = vmatpush2.bf16.msra.mxu1 %v2924_v0 }
 0x12f   :  { %v1450_v54 = vpop.f32.mrf.mxu1  ;;  %2184 = vmatprep.subr.bf16.mxu1 %v2929_v45  ;;  %v1410_v7 = vadd.f32 %v1409_v52, %v376_v5  ;;  %v1449_v8 = vadd.f32 %v1448_v49, %v1408_v6 }
 0x130   :  { %v1411_v56 = vpop.f32.mrf.mxu0 }
 0x131   :  { %v1452_v57 = vpop.f32.mrf.mxu1  ;;  %2144 = vmatpush2.bf16.msra.mxu0 %v2879_v51  ;;  %v1451_v9 = vadd.f32 %v1450_v54, %v1410_v7 }
 0x132   :  { %v1412_v59 = vpop.f32.mrf.mxu0  ;;  %2185 = vmatpush2.bf16.msra.mxu1 %v2927_v36  ;;  %v1781_v36 = vld [vmem:[%s3170_s4] sm:$0x3] }
 0x133   :  { %v1453_v60 = vpop.f32.mrf.mxu1  ;;  %v1786_v24 = vrot.slane %v1781_v36, %v3136_v2  ;;  %v1790_v4 = vrot.slane %v1781_v36, %v3142_v3 }
 0x135   :  { %v1530_v25 = vpop.f32.mrf.mxu1 }
 0x137   :  { %v1532_v10 = vpop.f32.mrf.mxu1 }
 0x139   :  { %v1534_v34 = vpop.f32.mrf.mxu1 }
 0x13b   :  { %v1535_v1 = vpop.f32.mrf.mxu1 }
 0x16c   :  { %v1489_v53 = vpop.f32.mrf.mxu0 }
 0x16d   :  { %v1490_v11 = vadd.f32 %v1489_v53, %v1449_v8  ;;  %v2201_v53 = vld [vmem:[%s3171_s5] sm:$0x3] }
 0x16e   :  { %v1491_v12 = vpop.f32.mrf.mxu0 }
 0x16f   :  { %v1531_v13 = vadd.f32 %v1530_v25, %v1490_v11  ;;  %v1492_v14 = vadd.f32 %v1491_v12, %v1451_v9 }
 0x170   :  { %v1493_v15 = vpop.f32.mrf.mxu0 }
 0x171   :  { %vm1701_vm1 = vcmp.gt.f32.partialorder %v1531_v13, 0.0  ;;  %v1705_v16 = vmul.f32 0.01, %v1531_v13  ;;  %v1533_v17 = vadd.f32 %v1532_v10, %v1492_v14  ;;  %v2206_v14 = vrot.slane %v2201_v53, %v3136_v2 }
 0x172   :  { %v1494_v18 = vpop.f32.mrf.mxu0  ;;  %v2210_v15 = vrot.slane %v2201_v53, %v3142_v3  ;;  %v2229_v3 = vand.u32 127, %v93_v40 }
 0x173   :  { %v1706_v19 = vmul.f32 0.01, %v1533_v17  ;;  %vm1702_vm2 = vcmp.gt.f32.partialorder %v1533_v17, 0.0  ;;  %v1709_v20 = vsel %vm1701_vm1, %v1531_v13, %v1705_v16 }
 0x174   :  { %v1713_v27 = vpack.c.bf16 %v1709_v20, %v1709_v20  ;;  %v2232_v30 = vsub.s32 %v2229_v3, %v3082_v46 }
 0x175   :  { %v1571_v21 = vpop.f32.mrf.mxu1  ;;  %v1710_v22 = vsel %vm1702_vm2, %v1533_v17, %v1706_v19 }
 0x176   :  { %v1714_v26 = vpack.c.bf16 %v1710_v22, %v1710_v22  ;;  %v1572_v39 = vadd.f32 %v1571_v21, %v380_v33 }
 0x177   :  { %v1573_v23 = vpop.f32.mrf.mxu1 }
 0x178   :  { %2145 = vmatprep.mubr.bf16.mxu0 %v1714_v26  ;;  %v1574_v42 = vadd.f32 %v1573_v23, %v384_v37  ;;  %v2219_v23 = vstv %s3172_s6  ;;  %s2998_s6 = scalar_lea.vmem %s2244_s26, 32 }
 0x179   :  { %v1575_v28 = vpop.f32.mrf.mxu1  ;;  %2146 = vmatmul.mubr.bf16.vlgmr.msra.gmra.mxu0 %v1713_v27  ;;  %p3000_p3 = scmp.lt.s32.totalorder %s2998_s6, %s2994_s27 }
 0x17b   :  { %v1576_v29 = vpop.f32.mrf.mxu1  ;;  %p3001_p4 = por %p3000_p3, %p2999_p2 }
 0x17d   :  { %p3002_p5 = pnand %p3001_p4, %p2995_p1 }
 0x1ac   :  { %v1612_v32 = vpop.f32.mrf.mxu0 }
 0x1ad   :  { %v1613_v43 = vadd.f32 %v1612_v32, %v1572_v39 }
 0x1ae   :  { %v1614_v35 = vpop.f32.mrf.mxu0 }
 0x1af   :  { %v1615_v48 = vadd.f32 %v1614_v35, %v1574_v42 }
 0x1b0   :  { %v1616_v38 = vpop.f32.mrf.mxu0 }
 0x1b2   :  { %v1617_v41 = vpop.f32.mrf.mxu0 }
 0x1b4   :  { %v1694_v47 = vpop.f32.mrf.mxu0 }
 0x1b5   :  { %v1653_v44 = vpop.f32.mrf.mxu1 }
 0x1b6   :  { %v1654_v49 = vadd.f32 %v1653_v44, %v1613_v43  ;;  %v1696_v51 = vpop.f32.mrf.mxu0 }
 0x1b7   :  { %v1655_v50 = vpop.f32.mrf.mxu1 }
 0x1b8   :  { %v1695_v52 = vadd.f32 %v1694_v47, %v1654_v49  ;;  %v1656_v54 = vadd.f32 %v1655_v50, %v1615_v48  ;;  %v1698_v56 = vpop.f32.mrf.mxu0 }
 0x1b9   :  { %v1657_v55 = vpop.f32.mrf.mxu1 }
 0x1ba   :  { %vm1703_vm3 = vcmp.gt.f32.partialorder %v1695_v52, 0.0  ;;  %v1707_v57 = vmul.f32 0.01, %v1695_v52  ;;  %v1697_v58 = vadd.f32 %v1696_v51, %v1656_v54  ;;  %v1699_v60 = vpop.f32.mrf.mxu0 }
 0x1bb   :  { %v1658_v59 = vpop.f32.mrf.mxu1 }
 0x1bc   :  { %vm1704_vm4 = vcmp.gt.f32.partialorder %v1697_v58, 0.0  ;;  %v1708_v61 = vmul.f32 0.01, %v1697_v58  ;;  %v1711_v25 = vsel %vm1703_vm3, %v1695_v52, %v1707_v57 }
 0x1bd   :  { %v1715_v63 = vpack.c.bf16 %v1711_v25, %v1711_v25 }
 0x1be   :  { %v1712_v62 = vsel %vm1704_vm4, %v1697_v58, %v1708_v61 }
 0x1bf   :  { %v1716_v10 = vpack.c.bf16 %v1712_v62, %v1712_v62 }
 0x1c1   :  { %2186 = vmatprep.mubr.bf16.mxu1 %v1716_v10 }
 0x1c2   :  { %2187 = vmatmul.mubr.bf16.vlgmr.msra.gmra.mxu1 %v1715_v63 }
 0x239   :  { %v2147_v34 = vpop.f32.mrf.mxu0 }
 0x23a   :  { %v2148_v5 = vadd.f32 %v2147_v34, %v1786_v24 }
 0x23b   :  { %v2149_v0 = vpop.f32.mrf.mxu0 }
 0x23c   :  { %v2150_v7 = vadd.f32 %v2149_v0, %v1790_v4 }
 0x23d   :  { %v2151_v1 = vpop.f32.mrf.mxu0 }
 0x23f   :  { %v2152_v45 = vpop.f32.mrf.mxu0 }
 0x282   :  { %v2188_v6 = vpop.f32.mrf.mxu1 }
 0x283   :  { %v2189_v8 = vadd.f32 %v2188_v6, %v2148_v5 }
 0x284   :  { %v2190_v9 = vpop.f32.mrf.mxu1 }
 0x285   :  { %vm2195_vm5 = vcmp.gt.f32.partialorder %v2189_v8, 0.0  ;;  %v2197_v11 = vmul.f32 0.01, %v2189_v8  ;;  %v2191_v12 = vadd.f32 %v2190_v9, %v2150_v7 }
 0x286   :  { %v2192_v13 = vpop.f32.mrf.mxu1 }
 0x287   :  { %vm2196_vm6 = vcmp.gt.f32.partialorder %v2191_v12, 0.0  ;;  %v2198_v16 = vmul.f32 0.01, %v2191_v12  ;;  %v2199_v17 = vsel %vm2195_vm5, %v2189_v8, %v2197_v11 }
 0x288   :  { %v2193_v18 = vpop.f32.mrf.mxu1  ;;  %v2213_v20 = vmul.f32 %v2206_v14, %v2199_v17 }
 0x289   :  { %v2200_v19 = vsel %vm2196_vm6, %v2191_v12, %v2198_v16 }
 0x28a   :  { %v2214_v21 = vmul.f32 %v2210_v15, %v2200_v19 }
 0x28c   :  { %v2215_v22 = vadd.f32 %v2214_v21, %v2213_v20 }
 0x28e   :  { %2216 = vadd.xlane.f32.xlu0 %v2215_v22 }
 0x317   :  { %v2217_v26 = vpop.xlane.xlu0 %2216 }
 0x318   :  { %v2220_v27 = vadd.f32 %v2219_v23, %v2217_v26 }
 0x31a   :  { %v2515_v28 = vmul.f32 -1.442695, %v2220_v27 }
 0x31c   :  { %2930 = vpow2.f32 %v2515_v28 }
 0x329   :  { %v2931_v2 = vpop.eup %2930 }
 0x32a   :  { %v2224_v29 = vadd.f32 1.0, %v2931_v2 }
 0x32c   :  { %2932 = vrcp.f32 %v2224_v29 }
 0x339   :  { %v2933_v31 = vpop.eup %2932 }
 0x33a   :  { %v2233_v32 = vrot.slane %v2933_v31, %v2232_v30 }
 0x33c   :  { %2236 = vst.msk [vmem:[#allocation9] sm:$0x1] %vm2235_vm7, %v2233_v32 }
 0x33d   :  { %3005 = shalt.err (!%p3002_p5)
}
 0x33e   :  { %2246 = dma.vmem_to_hbm [thread:$0]  %s2244_s26, 16, %s3173_s7, [#allocation5]  }
 0x33f   :  { %3018 = dma.done.wait [#allocation5], 16  }
 0x340   :  { %3019 = vsyncadd [#allocation5], 4294967280 }
 0x341   :  { %2250 = vsyncpa [#allocation4], 1 }
 0x342   :  { %2251 = vsyncpa [#allocation7], 1 }
 0x343   :  { %2252 = vsyncpa [#allocation5], 1 }

</bundles_post_ra>
